<compile_context>
chip_gen: v7x
topology: tpu7x:2x2x1
jax: 0.10.0
libtpu: 0.0.40
codegen_flags: <defaults>
</compile_context>

<pallas_src>
import functools
import math

import jax
import jax.numpy as jnp
from jax import lax
from jax.experimental import pallas as pl
from jax.experimental.pallas import tpu as pltpu


def _round_up(x, m):
    return (x + m - 1) // m * m


def _cdiv(a, b):
    return (a + b - 1) // b


# ---------------------------------------------------------------------------
# Kernel body
# ---------------------------------------------------------------------------

def _conv1d_kernel(x_hbm, w_ref, b_ref, o_ref, xbuf, sem, *,
                   k_size, dilation, t_out, l_win, n_lt, use_im2col):
    """One grid step: output tile (Cout, t_out) of batch element `b`.

    x_hbm : (N, Cin, Lp)            zero-padded input, left in HBM (manual DMA)
    w_ref : (Cout, K*Cin) or (K, Cout, Cin)   weights, VMEM resident, pre-cast
    b_ref : (Cout, 1) f32           bias, VMEM resident
    o_ref : (1, Cout, t_out)        output tile (lane-dense, auto-pipelined)
    xbuf  : (nbuf, Cin, l_win)      double-buffered input-window scratch
    sem   : (nbuf,)                 DMA semaphores
    """
    b = pl.program_id(0)
    lt = pl.program_id(1)
    slot = lt % 2 if n_lt > 1 else 0

    def window_copy(batch, tile, buf_slot):
        start = pl.multiple_of(tile * t_out, 128)
        return pltpu.make_async_copy(
            x_hbm.at[batch, :, pl.ds(start, l_win)],
            xbuf.at[buf_slot],
            sem.at[buf_slot])

    # First tile of each batch row: nothing has been prefetched for it yet.
    # TODO(synk): the last tile of row b could prefetch row b+1's first window
    # to hide this DMA, but doing so safely under megacore batch sharding needs
    # per-core first-step detection; left as a known (1/n_lt) pipeline bubble.
    @pl.when(lt == 0)
    def _():
        window_copy(b, lt, slot).start()

    # Wait for this tile's window (descriptor identical to the one started,
    # whether it came from the priming above or last step's prefetch).
    window_copy(b, lt, slot).wait()

    # Prefetch the next tile's window into the other slot; the DMA overlaps
    # with the matmul below.
    if n_lt > 1:
        @pl.when(lt + 1 < n_lt)
        def _():
            window_copy(b, lt + 1, 1 - slot).start()

    x_win = xbuf[slot]                                        # (Cin, l_win)

    acc = None
    if use_im2col:
        # Small Cin: fold the K taps into one (Cout, K*Cin) @ (K*Cin, T)
        # contraction so the MXU sees a deeper reduction.
        taps = [x_win[:, kk * dilation: kk * dilation + t_out]
                for kk in range(k_size)]
        patch = taps[0] if k_size == 1 else jnp.concatenate(taps, axis=0)
        acc = jnp.dot(w_ref[...], patch, preferred_element_type=jnp.float32)
    else:
        # Large Cin: K accumulating (Cout, Cin) @ (Cin, T) matmuls straight
        # from the window buffer -- no (K*Cin, T) im2col patch materialized.
        for kk in range(k_size):
            part = jnp.dot(w_ref[kk],
                           x_win[:, kk * dilation: kk * dilation + t_out],
                           preferred_element_type=jnp.float32)
            acc = part if acc is None else acc + part

    acc = acc + b_ref[...]                                    # f32 bias add
    o_ref[0] = acc.astype(o_ref.dtype)


# ---------------------------------------------------------------------------
# Sizing helpers
# ---------------------------------------------------------------------------

def _vmem_limit_bytes():
    """Per-kernel VMEM budget derived from the chip's physical VMEM."""
    phys = None
    try:
        info = pltpu.get_tpu_info()
        phys = int(getattr(info, "vmem_capacity_bytes", 0)) or None
    except Exception:
        phys = None
    if phys is None:
        phys = 64 * 1024 * 1024          # conservative: v7x per-TensorCore VMEM
    # ~48 MiB on v7x (64 MiB physical), ~96 MiB on v5e/v6e (128 MiB physical);
    # leaves headroom for Mosaic internal scratch, semaphores and spills.
    return min(phys * 3 // 4, 96 * 1024 * 1024)


def _pick_t_out(l_run, *, cin, cout, k, dilation, in_item, out_item,
                w_bytes, use_im2col, budget, max_tile):
    """Pick the lane tile: minimize padded length first, then grid-step count,
    subject to all buffers (double buffering included) fitting in `budget`."""
    cap = _round_up(l_run, 128)
    hi = max(128, min(cap, _round_up(max_tile, 128)))

    def vmem_bytes(t):
        l_win = _round_up(t + (k - 1) * dilation, 128)
        nbuf = 2 if _cdiv(l_run, t) > 1 else 1
        xbuf = nbuf * _round_up(cin, 8) * l_win * in_item
        outb = 2 * _round_up(cout, 8) * t * out_item          # auto double-buffer
        accb = 2 * _round_up(cout, 8) * t * 4                 # f32 acc + temps
        patch = _round_up(k * cin, 8) * t * in_item if use_im2col else 0
        return xbuf + outb + accb + patch + w_bytes

    best_t, best_key = 128, None
    for t in range(128, hi + 1, 128):
        if vmem_bytes(t) > budget:
            continue
        n_lt = _cdiv(l_run, t)
        key = (n_lt * t, n_lt)            # (padded length, number of grid steps)
        if best_key is None or key < best_key:
            best_t, best_key = t, key
    return best_t


# ---------------------------------------------------------------------------
# Wrapper
# ---------------------------------------------------------------------------

def conv1d_pallas(x, weight, bias=None, *, stride=1, dilation=1, padding=None,
                  groups=1, compute_dtype=None, max_tile=8192):
    """Forward pass of the Conv1d module (torch.nn.Conv1d semantics, NCL layout).

    x      : (N, Cin, L)
    weight : (Cout, Cin, K)   (PyTorch layout)
    bias   : (Cout,) or None
    Returns (N, Cout, L_out).
    """
    n, cin, l = x.shape
    cout, cin_w, k = weight.shape

    if groups != 1:
        # TODO(synk): grouped Conv1d (groups > 1) not implemented; the module
        # default (groups=1) is all the model uses.
        raise NotImplementedError("conv1d_pallas only supports groups == 1")
    assert cin_w == cin, (cin_w, cin)

    if padding is None:
        assert k % 2 == 1, "padding=None requires an odd kernel size"
        padding = dilation * (k - 1) // 2

    l_out = (l + 2 * padding - dilation * (k - 1) - 1) // stride + 1
    assert l_out > 0

    # TODO(synk): stride > 1 is computed as the stride-1 convolution followed
    # by decimation in the wrapper (exact result, some redundant compute); the
    # module default / model usage is stride == 1.
    l_run = (l_out - 1) * stride + 1            # stride-1 outputs actually needed

    out_dtype = x.dtype
    in_dtype = jnp.dtype(compute_dtype) if compute_dtype is not None else x.dtype
    in_item = in_dtype.itemsize
    out_item = jnp.dtype(out_dtype).itemsize

    # Large Cin: accumulate K matmuls directly (no im2col patch materialized).
    # Small Cin: fold K into the contraction so the MXU is not starved.
    use_im2col = cin < 128

    # Layout-padded single-copy weight footprint in VMEM.
    if use_im2col:
        w_bytes_1 = _round_up(cout, 8) * _round_up(k * cin, 128) * in_item
    else:
        w_bytes_1 = k * _round_up(cout, 8) * _round_up(cin, 128) * in_item

    vmem_limit = _vmem_limit_bytes()
    budget = max(vmem_limit - 6 * 1024 * 1024, vmem_limit // 2)

    # Weights pre-cast / pre-reshaped in the wrapper (no per-tile casts in the
    # kernel body); bias pre-cast to f32 (the bias add is done in f32).
    if use_im2col:
        # (Cout, Cin, K) -> (Cout, K*Cin), k-major, matching the im2col rows.
        w_arg = jnp.transpose(weight, (0, 2, 1)).reshape(cout, k * cin)
        w_arg = w_arg.astype(in_dtype)
        w_block, w_index = (cout, k * cin), (lambda b, t: (0, 0))
    else:
        # (Cout, Cin, K) -> (K, Cout, Cin): one (Cout, Cin) tap matrix per k.
        # NOTE: model-scale Cin is already a multiple of the MXU width, so no
        # explicit contraction padding is added here.
        w_arg = jnp.transpose(weight, (2, 0, 1)).astype(in_dtype)
        w_block, w_index = (k, cout, cin), (lambda b, t: (0, 0, 0))

    b_vec = jnp.zeros((cout,), jnp.float32) if bias is None else bias
    b2 = b_vec.astype(jnp.float32).reshape(cout, 1)

    def build_and_run(single_buffer_invariants):
        w_bufs = 1 if single_buffer_invariants else 2
        t_out = _pick_t_out(l_run, cin=cin, cout=cout, k=k, dilation=dilation,
                            in_item=in_item, out_item=out_item,
                            w_bytes=w_bufs * w_bytes_1, use_im2col=use_im2col,
                            budget=budget, max_tile=max_tile)
        n_lt = _cdiv(l_run, t_out)
        l_run_pad = n_lt * t_out
        l_win = _round_up(t_out + (k - 1) * dilation, 128)   # 128-aligned DMA window
        nbuf = 2 if n_lt > 1 else 1

        # Zero-pad the length axis once ('zeros' padding mode); includes the
        # tile/window rounding slack so every window read stays in bounds.
        # (cast + pad fuse into one XLA op when compute_dtype is set.)
        lp = max(padding + l, (n_lt - 1) * t_out + l_win)
        pad_right = lp - padding - l
        x_pad = jnp.pad(x.astype(in_dtype), ((0, 0), (0, 0), (padding, pad_right)))

        kernel = functools.partial(
            _conv1d_kernel, k_size=k, dilation=dilation, t_out=t_out,
            l_win=l_win, n_lt=n_lt, use_im2col=use_im2col)

        cost = pl.CostEstimate(
            flops=2 * n * l_run_pad * cout * cin * k,
            transcendentals=0,
            bytes_accessed=(n * n_lt * cin * l_win * in_item          # halo re-reads
                            + k * cout * cin * in_item + cout * 4
                            + n * cout * l_run_pad * out_item))

        # Grid-invariant blocks: request single buffering (halves weight VMEM).
        pm = {"pipeline_mode": pl.Buffered(1)} if single_buffer_invariants else {}
        weight_spec = pl.BlockSpec(w_block, w_index, **pm)
        bias_spec = pl.BlockSpec((cout, 1), lambda b, t: (0, 0), **pm)

        out = pl.pallas_call(
            kernel,
            out_shape=jax.ShapeDtypeStruct((n, cout, l_run_pad), out_dtype),
            grid_spec=pltpu.PrefetchScalarGridSpec(
                num_scalar_prefetch=0,
                grid=(n, n_lt),
                in_specs=[
                    pl.BlockSpec(memory_space=pl.ANY),   # x_pad stays in HBM
                    weight_spec,                         # VMEM-resident weights
                    bias_spec,                           # VMEM-resident bias
                ],
                out_specs=pl.BlockSpec((1, cout, t_out), lambda b, t: (b, 0, t)),
                scratch_shapes=[
                    pltpu.VMEM((nbuf, cin, l_win), in_dtype),
                    pltpu.SemaphoreType.DMA((nbuf,)),
                ],
            ),
            # TODO(synk): on v7x a batch-1 call uses a single TensorCore; making
            # the length axis core-parallel needs per-core-safe window priming.
            compiler_params=pltpu.CompilerParams(
                dimension_semantics=("parallel", "arbitrary"),
                vmem_limit_bytes=vmem_limit),
            cost_estimate=cost,
        )(x_pad, w_arg, b2)

        # Crop the tile-rounding slack / apply the stride only when needed.
        if stride == 1 and l_run_pad == l_run:
            return out
        return out[:, :, :l_run:stride]

    if hasattr(pl, "Buffered"):
        try:
            return build_and_run(True)
        except Exception:
            # pipeline_mode single-buffering not supported here -> default path.
            pass
    return build_and_run(False)


# ---------------------------------------------------------------------------
# Parameter init matching the PyTorch module
# ---------------------------------------------------------------------------

_GAINS = {"linear": 1.0, "conv1d": 1.0, "sigmoid": 1.0,
          "relu": math.sqrt(2.0), "tanh": 5.0 / 3.0}


def init_conv1d_params(key, in_channels, out_channels, kernel_size,
                       w_init_gain="linear"):
    """xavier_uniform_ weight (gain = nn.init.calculate_gain) + default bias."""
    fan_in = in_channels * kernel_size
    fan_out = out_channels * kernel_size
    limit = _GAINS[w_init_gain] * math.sqrt(6.0 / (fan_in + fan_out))
    k_w, k_b = jax.random.split(key)
    weight = jax.random.uniform(k_w, (out_channels, in_channels, kernel_size),
                                jnp.float32, minval=-limit, maxval=limit)
    b_lim = 1.0 / math.sqrt(fan_in)
    bias = jax.random.uniform(k_b, (out_channels,), jnp.float32,
                              minval=-b_lim, maxval=b_lim)
    return weight, bias


if __name__ == "__main__":
    key = jax.random.PRNGKey(0)

    def ref_conv1d(x, w, b, *, stride=1, dilation=1):
        k = w.shape[-1]
        padding = dilation * (k - 1) // 2
        y = lax.conv_general_dilated(
            x, w, window_strides=(stride,), padding=((padding, padding),),
            rhs_dilation=(dilation,),
            dimension_numbers=("NCH", "OIH", "NCH"),
            precision=lax.Precision.HIGHEST)
        return y + b[None, :, None]

    def check(name, x, w, b, *, stride=1, dilation=1, compute_dtype=None,
              max_tile=8192, atol=1e-3, rtol=1e-3):
        y = conv1d_pallas(x, w, b, stride=stride, dilation=dilation,
                          compute_dtype=compute_dtype, max_tile=max_tile)
        jax.block_until_ready(y)
        y_ref = ref_conv1d(x, w, b, stride=stride, dilation=dilation)
        assert y.shape == y_ref.shape, (name, y.shape, y_ref.shape)
        assert jnp.allclose(y, y_ref, atol=atol, rtol=rtol), name

    k0, k1, k2, k3, k4 = jax.random.split(key, 5)

    # Small shapes consistent with the module: batch=2, channels 4 -> 8, seq=16.
    x_small = jax.random.normal(k0, (2, 4, 16), jnp.float32)
    w3, b3 = init_conv1d_params(k1, 4, 8, 3)
    w5, b5 = init_conv1d_params(k2, 4, 8, 5)
    check("k3_same", x_small, w3, b3)                  # module defaults (K=3, 'same')
    check("k5_dil2", x_small, w5, b5, dilation=2)      # dilated taps
    check("k3_stride2", x_small, w3, b3, stride=2)     # strided (decimation path)

    # Longer sequence: adaptive single-tile path, and a forced small tile to
    # exercise the double-buffered windowed-DMA pipeline (f32 and bf16 compute).
    kx, kp = jax.random.split(k3)
    x_long = jax.random.normal(kx, (2, 8, 1200), jnp.float32)
    wl, bl = init_conv1d_params(kp, 8, 16, 5)
    check("long_adaptive_f32", x_long, wl, bl)
    check("long_multitile_f32", x_long, wl, bl, max_tile=256)
    check("long_multitile_bf16", x_long, wl, bl, max_tile=256,
          compute_dtype=jnp.bfloat16, atol=1e-1, rtol=1e-1)

    # Wide channels exercise the direct K-tap accumulation path (no im2col).
    kx2, kp2 = jax.random.split(k4)
    x_wide = jax.random.normal(kx2, (1, 128, 640), jnp.float32)
    ww, bw = init_conv1d_params(kp2, 128, 128, 3)
    check("wide_kdot_f32", x_wide, ww, bw, max_tile=256, atol=1e-2, rtol=1e-2)

    print("KERNEL_OK")
</pallas_src>

<mosaic_0001>
module attributes {stable_mosaic.version = 11 : i64} {
  func.func @_conv1d_kernel(%arg0: i32, %arg1: i32, %arg2: memref<2x4x256xf32, #tpu.memory_space<any>>, %arg3: memref<8x12xf32, #tpu.memory_space<vmem>>, %arg4: memref<8x1xf32, #tpu.memory_space<vmem>>, %arg5: memref<1x8x128xf32, #tpu.memory_space<vmem>>, %arg6: memref<1x4x256xf32, #tpu.memory_space<vmem>>, %arg7: memref<1x!tpu.dma_semaphore, #tpu.memory_space<semaphore_mem>>) attributes {dimension_semantics = [#tpu.dimension_semantics<parallel>, #tpu.dimension_semantics<arbitrary>], iteration_bounds = array<i64: 2, 1>, scalar_prefetch = 0 : i64, scratch_operands = 2 : i64, tpu.core_type = #tpu.core_type<tc>, window_params = [{}, {pipeline_mode = #tpu.pipeline_mode<synchronous>, transform_indices = @transform_1, window_bounds = array<i64: 8, 12>}, {pipeline_mode = #tpu.pipeline_mode<synchronous>, transform_indices = @transform_2, window_bounds = array<i64: 8, 1>}, {transform_indices = @transform_3, window_bounds = array<i64: 1, 8, 128>}]} {
    %c0_i32 = arith.constant 0 : i32
    %0 = arith.cmpi eq, %arg1, %c0_i32 : i32
    %1 = arith.extui %0 : i1 to i32
    %c0_i32_0 = arith.constant 0 : i32
    %2 = arith.cmpi ne, %1, %c0_i32_0 : i32
    scf.if %2 {
      %c128_i32_15 = arith.constant 128 : i32
      %25 = arith.muli %arg1, %c128_i32_15 : i32
      %26 = tpu.assume_multiple %25, 128 : i32
      %c0_i32_16 = arith.constant 0 : i32
      %c0_i32_17 = arith.constant 0 : i32
      %c0_i32_18 = arith.constant 0 : i32
      %27 = tpu.memref_slice %arg2[%arg0, %c0_i32_18, %26] : memref<2x4x256xf32, #tpu.memory_space<any>> -> memref<1x4x256xf32, #tpu.memory_space<any>>
      %28 = tpu.memref_squeeze %27 : memref<1x4x256xf32, #tpu.memory_space<any>> -> memref<4x256xf32, #tpu.memory_space<any>>
      %c0_i32_19 = arith.constant 0 : i32
      %c0_i32_20 = arith.constant 0 : i32
      %29 = tpu.memref_slice %arg6[%c0_i32_16, %c0_i32_19, %c0_i32_20] : memref<1x4x256xf32, #tpu.memory_space<vmem>> -> memref<1x4x256xf32, #tpu.memory_space<vmem>>
      %30 = tpu.memref_squeeze %29 : memref<1x4x256xf32, #tpu.memory_space<vmem>> -> memref<4x256xf32, #tpu.memory_space<vmem>>
      %31 = tpu.memref_slice %arg7[%c0_i32_17] : memref<1x!tpu.dma_semaphore, #tpu.memory_space<semaphore_mem>> -> memref<1x!tpu.dma_semaphore, #tpu.memory_space<semaphore_mem>>
      %32 = tpu.memref_squeeze %31 : memref<1x!tpu.dma_semaphore, #tpu.memory_space<semaphore_mem>> -> memref<!tpu.dma_semaphore, #tpu.memory_space<semaphore_mem>>
      tpu.enqueue_dma source(%28 : memref<4x256xf32, #tpu.memory_space<any>>) target(%30 : memref<4x256xf32, #tpu.memory_space<vmem>>) target_semaphore(%32 : memref<!tpu.dma_semaphore, #tpu.memory_space<semaphore_mem>>)
    } else {
    }
    %c128_i32 = arith.constant 128 : i32
    %3 = arith.muli %arg1, %c128_i32 : i32
    %4 = tpu.assume_multiple %3, 128 : i32
    %c0_i32_1 = arith.constant 0 : i32
    %c0_i32_2 = arith.constant 0 : i32
    %c0_i32_3 = arith.constant 0 : i32
    %5 = tpu.memref_slice %arg2[%arg0, %c0_i32_3, %4] : memref<2x4x256xf32, #tpu.memory_space<any>> -> memref<1x4x256xf32, #tpu.memory_space<any>>
    %6 = tpu.memref_squeeze %5 : memref<1x4x256xf32, #tpu.memory_space<any>> -> memref<4x256xf32, #tpu.memory_space<any>>
    %c0_i32_4 = arith.constant 0 : i32
    %c0_i32_5 = arith.constant 0 : i32
    %7 = tpu.memref_slice %arg6[%c0_i32_1, %c0_i32_4, %c0_i32_5] : memref<1x4x256xf32, #tpu.memory_space<vmem>> -> memref<1x4x256xf32, #tpu.memory_space<vmem>>
    %8 = tpu.memref_squeeze %7 : memref<1x4x256xf32, #tpu.memory_space<vmem>> -> memref<4x256xf32, #tpu.memory_space<vmem>>
    %9 = tpu.memref_slice %arg7[%c0_i32_2] : memref<1x!tpu.dma_semaphore, #tpu.memory_space<semaphore_mem>> -> memref<1x!tpu.dma_semaphore, #tpu.memory_space<semaphore_mem>>
    %10 = tpu.memref_squeeze %9 : memref<1x!tpu.dma_semaphore, #tpu.memory_space<semaphore_mem>> -> memref<!tpu.dma_semaphore, #tpu.memory_space<semaphore_mem>>
    tpu.wait_dma2 semaphore(%10 : memref<!tpu.dma_semaphore, #tpu.memory_space<semaphore_mem>>) src(%6 : memref<4x256xf32, #tpu.memory_space<any>>) dst(%8 : memref<4x256xf32, #tpu.memory_space<vmem>>)
    %c0 = arith.constant 0 : index
    %c0_6 = arith.constant 0 : index
    %c0_7 = arith.constant 0 : index
    %11 = vector.load %arg6[%c0, %c0_6, %c0_7] : memref<1x4x256xf32, #tpu.memory_space<vmem>>, vector<1x4x256xf32>
    %12 = vector.shape_cast %11 : vector<1x4x256xf32> to vector<4x256xf32>
    %13 = vector.extract_strided_slice %12 {offsets = [0, 0], sizes = [4, 128], strides = [1, 1]} : vector<4x256xf32> to vector<4x128xf32>
    %14 = vector.extract_strided_slice %12 {offsets = [0, 1], sizes = [4, 128], strides = [1, 1]} : vector<4x256xf32> to vector<4x128xf32>
    %15 = vector.extract_strided_slice %12 {offsets = [0, 2], sizes = [4, 128], strides = [1, 1]} : vector<4x256xf32> to vector<4x128xf32>
    %16 = tpu.concatenate %13, %14, %15 in 0 : vector<4x128xf32>, vector<4x128xf32>, vector<4x128xf32> -> vector<12x128xf32>
    %c0_8 = arith.constant 0 : index
    %c0_9 = arith.constant 0 : index
    %17 = vector.load %arg3[%c0_8, %c0_9] : memref<8x12xf32, #tpu.memory_space<vmem>>, vector<8x12xf32>
    %cst = arith.constant dense<0.000000e+00> : vector<8x128xf32>
    %18 = tpu.matmul %17, %16, %cst {dimension_numbers = #tpu.dot_dimension_numbers<[1], [0], [0], [1], [0, 0, 1, 1], [], []>} : vector<8x12xf32>, vector<12x128xf32>, vector<8x128xf32> -> vector<8x128xf32>
    %c0_10 = arith.constant 0 : index
    %c0_11 = arith.constant 0 : index
    %19 = vector.load %arg4[%c0_10, %c0_11] : memref<8x1xf32, #tpu.memory_space<vmem>>, vector<8x1xf32>
    %20 = vector.broadcast %19 : vector<8x1xf32> to vector<8x128xf32>
    %21 = arith.addf %18, %20 : vector<8x128xf32>
    %c0_12 = arith.constant 0 : index
    %c0_13 = arith.constant 0 : index
    %c0_14 = arith.constant 0 : index
    %22 = vector.load %arg5[%c0_12, %c0_13, %c0_14] : memref<1x8x128xf32, #tpu.memory_space<vmem>>, vector<1x8x128xf32>
    %23 = vector.shape_cast %22 : vector<1x8x128xf32> to vector<8x128xf32>
    %24 = vector.shape_cast %21 : vector<8x128xf32> to vector<1x8x128xf32>
    tpu.vector_store %arg5[%c0_12, %c0_13, %c0_14], %24 {strides = array<i32>} : memref<1x8x128xf32, #tpu.memory_space<vmem>>, vector<1x8x128xf32>,
    return
  }
  func.func @transform_1(%arg0: i32, %arg1: i32) -> (i32, i32) {
    %c0_i32 = arith.constant 0 : i32
    %c0_i32_0 = arith.constant 0 : i32
    %c0_i32_1 = arith.constant 0 : i32
    return %c0_i32, %c0_i32_0 : i32, i32
  }
  func.func @transform_2(%arg0: i32, %arg1: i32) -> (i32, i32) {
    %c0_i32 = arith.constant 0 : i32
    %c0_i32_0 = arith.constant 0 : i32
    %c0_i32_1 = arith.constant 0 : i32
    return %c0_i32, %c0_i32_0 : i32, i32
  }
  func.func @transform_3(%arg0: i32, %arg1: i32) -> (i32, i32, i32) {
    %c0_i32 = arith.constant 0 : i32
    %c0_i32_0 = arith.constant 0 : i32
    return %arg0, %c0_i32, %arg1 : i32, i32, i32
  }
}

module attributes {stable_mosaic.version = 11 : i64} {
  func.func @_conv1d_kernel(%arg0: i32, %arg1: i32, %arg2: memref<2x4x256xf32, #tpu.memory_space<any>>, %arg3: memref<8x12xf32, #tpu.memory_space<vmem>>, %arg4: memref<8x1xf32, #tpu.memory_space<vmem>>, %arg5: memref<1x8x128xf32, #tpu.memory_space<vmem>>, %arg6: memref<1x4x256xf32, #tpu.memory_space<vmem>>, %arg7: memref<1x!tpu.dma_semaphore, #tpu.memory_space<semaphore_mem>>) attributes {dimension_semantics = [#tpu.dimension_semantics<parallel>, #tpu.dimension_semantics<arbitrary>], iteration_bounds = array<i64: 2, 1>, scalar_prefetch = 0 : i64, scratch_operands = 2 : i64, tpu.core_type = #tpu.core_type<tc>, window_params = [{}, {pipeline_mode = #tpu.pipeline_mode<synchronous>, transform_indices = @transform_1, window_bounds = array<i64: 8, 12>}, {pipeline_mode = #tpu.pipeline_mode<synchronous>, transform_indices = @transform_2, window_bounds = array<i64: 8, 1>}, {transform_indices = @transform_3, window_bounds = array<i64: 1, 8, 128>}]} {
    %c0_i32 = arith.constant 0 : i32
    %0 = arith.cmpi eq, %arg1, %c0_i32 : i32
    %1 = arith.extui %0 : i1 to i32
    %c0_i32_0 = arith.constant 0 : i32
    %2 = arith.cmpi ne, %1, %c0_i32_0 : i32
    scf.if %2 {
      %c128_i32_15 = arith.constant 128 : i32
      %25 = arith.muli %arg1, %c128_i32_15 : i32
      %26 = tpu.assume_multiple %25, 128 : i32
      %c0_i32_16 = arith.constant 0 : i32
      %c0_i32_17 = arith.constant 0 : i32
      %c0_i32_18 = arith.constant 0 : i32
      %27 = tpu.memref_slice %arg2[%arg0, %c0_i32_18, %26] : memref<2x4x256xf32, #tpu.memory_space<any>> -> memref<1x4x256xf32, #tpu.memory_space<any>>
      %28 = tpu.memref_squeeze %27 : memref<1x4x256xf32, #tpu.memory_space<any>> -> memref<4x256xf32, #tpu.memory_space<any>>
      %c0_i32_19 = arith.constant 0 : i32
      %c0_i32_20 = arith.constant 0 : i32
      %29 = tpu.memref_slice %arg6[%c0_i32_16, %c0_i32_19, %c0_i32_20] : memref<1x4x256xf32, #tpu.memory_space<vmem>> -> memref<1x4x256xf32, #tpu.memory_space<vmem>>
      %30 = tpu.memref_squeeze %29 : memref<1x4x256xf32, #tpu.memory_space<vmem>> -> memref<4x256xf32, #tpu.memory_space<vmem>>
      %31 = tpu.memref_slice %arg7[%c0_i32_17] : memref<1x!tpu.dma_semaphore, #tpu.memory_space<semaphore_mem>> -> memref<1x!tpu.dma_semaphore, #tpu.memory_space<semaphore_mem>>
      %32 = tpu.memref_squeeze %31 : memref<1x!tpu.dma_semaphore, #tpu.memory_space<semaphore_mem>> -> memref<!tpu.dma_semaphore, #tpu.memory_space<semaphore_mem>>
      tpu.enqueue_dma source(%28 : memref<4x256xf32, #tpu.memory_space<any>>) target(%30 : memref<4x256xf32, #tpu.memory_space<vmem>>) target_semaphore(%32 : memref<!tpu.dma_semaphore, #tpu.memory_space<semaphore_mem>>)
    } else {
    }
    %c128_i32 = arith.constant 128 : i32
    %3 = arith.muli %arg1, %c128_i32 : i32
    %4 = tpu.assume_multiple %3, 128 : i32
    %c0_i32_1 = arith.constant 0 : i32
    %c0_i32_2 = arith.constant 0 : i32
    %c0_i32_3 = arith.constant 0 : i32
    %5 = tpu.memref_slice %arg2[%arg0, %c0_i32_3, %4] : memref<2x4x256xf32, #tpu.memory_space<any>> -> memref<1x4x256xf32, #tpu.memory_space<any>>
    %6 = tpu.memref_squeeze %5 : memref<1x4x256xf32, #tpu.memory_space<any>> -> memref<4x256xf32, #tpu.memory_space<any>>
    %c0_i32_4 = arith.constant 0 : i32
    %c0_i32_5 = arith.constant 0 : i32
    %7 = tpu.memref_slice %arg6[%c0_i32_1, %c0_i32_4, %c0_i32_5] : memref<1x4x256xf32, #tpu.memory_space<vmem>> -> memref<1x4x256xf32, #tpu.memory_space<vmem>>
    %8 = tpu.memref_squeeze %7 : memref<1x4x256xf32, #tpu.memory_space<vmem>> -> memref<4x256xf32, #tpu.memory_space<vmem>>
    %9 = tpu.memref_slice %arg7[%c0_i32_2] : memref<1x!tpu.dma_semaphore, #tpu.memory_space<semaphore_mem>> -> memref<1x!tpu.dma_semaphore, #tpu.memory_space<semaphore_mem>>
    %10 = tpu.memref_squeeze %9 : memref<1x!tpu.dma_semaphore, #tpu.memory_space<semaphore_mem>> -> memref<!tpu.dma_semaphore, #tpu.memory_space<semaphore_mem>>
    tpu.wait_dma2 semaphore(%10 : memref<!tpu.dma_semaphore, #tpu.memory_space<semaphore_mem>>) src(%6 : memref<4x256xf32, #tpu.memory_space<any>>) dst(%8 : memref<4x256xf32, #tpu.memory_space<vmem>>)
    %c0 = arith.constant 0 : index
    %c0_6 = arith.constant 0 : index
    %c0_7 = arith.constant 0 : index
    %11 = vector.load %arg6[%c0, %c0_6, %c0_7] : memref<1x4x256xf32, #tpu.memory_space<vmem>>, vector<1x4x256xf32>
    %12 = vector.shape_cast %11 : vector<1x4x256xf32> to vector<4x256xf32>
    %13 = vector.extract_strided_slice %12 {offsets = [0, 0], sizes = [4, 128], strides = [1, 1]} : vector<4x256xf32> to vector<4x128xf32>
    %14 = vector.extract_strided_slice %12 {offsets = [0, 1], sizes = [4, 128], strides = [1, 1]} : vector<4x256xf32> to vector<4x128xf32>
    %15 = vector.extract_strided_slice %12 {offsets = [0, 2], sizes = [4, 128], strides = [1, 1]} : vector<4x256xf32> to vector<4x128xf32>
    %16 = tpu.concatenate %13, %14, %15 in 0 : vector<4x128xf32>, vector<4x128xf32>, vector<4x128xf32> -> vector<12x128xf32>
    %c0_8 = arith.constant 0 : index
    %c0_9 = arith.constant 0 : index
    %17 = vector.load %arg3[%c0_8, %c0_9] : memref<8x12xf32, #tpu.memory_space<vmem>>, vector<8x12xf32>
    %cst = arith.constant dense<0.000000e+00> : vector<8x128xf32>
    %18 = tpu.matmul %17, %16, %cst {dimension_numbers = #tpu.dot_dimension_numbers<[1], [0], [0], [1], [0, 0, 1, 1], [], []>} : vector<8x12xf32>, vector<12x128xf32>, vector<8x128xf32> -> vector<8x128xf32>
    %c0_10 = arith.constant 0 : index
    %c0_11 = arith.constant 0 : index
    %19 = vector.load %arg4[%c0_10, %c0_11] : memref<8x1xf32, #tpu.memory_space<vmem>>, vector<8x1xf32>
    %20 = vector.broadcast %19 : vector<8x1xf32> to vector<8x128xf32>
    %21 = arith.addf %18, %20 : vector<8x128xf32>
    %c0_12 = arith.constant 0 : index
    %c0_13 = arith.constant 0 : index
    %c0_14 = arith.constant 0 : index
    %22 = vector.load %arg5[%c0_12, %c0_13, %c0_14] : memref<1x8x128xf32, #tpu.memory_space<vmem>>, vector<1x8x128xf32>
    %23 = vector.shape_cast %22 : vector<1x8x128xf32> to vector<8x128xf32>
    %24 = vector.shape_cast %21 : vector<8x128xf32> to vector<1x8x128xf32>
    tpu.vector_store %arg5[%c0_12, %c0_13, %c0_14], %24 {strides = array<i32>} : memref<1x8x128xf32, #tpu.memory_space<vmem>>, vector<1x8x128xf32>,
    return
  }
  func.func @transform_1(%arg0: i32, %arg1: i32) -> (i32, i32) {
    %c0_i32 = arith.constant 0 : i32
    %c0_i32_0 = arith.constant 0 : i32
    %c0_i32_1 = arith.constant 0 : i32
    return %c0_i32, %c0_i32_0 : i32, i32
  }
  func.func @transform_2(%arg0: i32, %arg1: i32) -> (i32, i32) {
    %c0_i32 = arith.constant 0 : i32
    %c0_i32_0 = arith.constant 0 : i32
    %c0_i32_1 = arith.constant 0 : i32
    return %c0_i32, %c0_i32_0 : i32, i32
  }
  func.func @transform_3(%arg0: i32, %arg1: i32) -> (i32, i32, i32) {
    %c0_i32 = arith.constant 0 : i32
    %c0_i32_0 = arith.constant 0 : i32
    return %arg0, %c0_i32, %arg1 : i32, i32, i32
  }
}

</mosaic_0001>

<bundles_post_ra>
// kernel: tpu_custom_call.1
= control target key start
LH: loop header
LB: loop body
LE: loop exit
PB: predicated region body
PF: predicated region fallthrough
CT: control target
= control target key end

     0   :  { %8 = vsyncpa [#allocation5], 0  ;;  %s726_s0 = inlined_call_operand.hbm [shape: f32[2,4,256], index: 0, kind: input, shape index: {}]   ;;  %s727_s1 = inlined_call_operand.vmem [shape: f32[8,12], index: 1, kind: input, shape index: {}]   ;;  %s728_s2 = inlined_call_operand.vmem [shape: f32[8,1], index: 2, kind: input, shape index: {}]   ;;  %s729_s3 = inlined_call_operand.hbm [shape: f32[2,8,128], index: 3, kind: output, shape index: {}]  }
   0x1   :  { %10 = vsyncpa [#allocation5 + $0x1], 0  ;;  %s589_s12 = smov 0   ;;  %s591_s13 = smov 0  }
   0x2   :  { %s593_s14 = smov 0   ;;  %s595_s15 = smov 0  }
   0x3   :  { %s597_s16 = smov 0   ;;  %s599_s17 = smov 0  }
   0x4 LB: > { %s348_s18 = sadd.s32 4294967295, %s558_s17   ;;  %s349_s19 = sadd.s32 4294967294, %s558_s17   ;;  %s558_s17 = sphi %s599_s17, %s16_s17   ;;  %s554_s16 = sphi %s597_s16, %s736_s16   ;;  %s550_s15 = sphi %s595_s15, %s735_s15   ;;  %s546_s14 = sphi %s593_s14, %s734_s14   ;;  %s542_s13 = sphi %s591_s13, %s733_s13   ;;  %s538_s12 = sphi %s589_s12, %s732_s12  }
   0x5   : > { %s28_s20 = sadd.s32 1, %s554_s16  ;;  %s79_s21 = sadd.s32 1, %s546_s14 }
   0x6   : > { %p30_p0 = scmp.ge.s32.totalorder %s28_s20, 2  ;;  %p89_p1 = scmp.ne.s32.totalorder %s546_s14, %s542_s13 }
   0x7   : > { %p90_p2 = scmp.eq.s32.totalorder %s348_s18, 1  ;;  %p95_p3 = scmp.ne.s32.totalorder %s542_s13, %s538_s12 }
   0x8   : > { %s738_s20 = smov (%p30_p0, %s28_s20), 0  ;;  %p96_p5 = scmp.eq.s32.totalorder %s349_s19, 1 }
   0x9   : > { %p629_p4 = por %p90_p2, %p89_p1  ;;  %s74_s23 = ssub.s32 %s554_s16, %s738_s20 }
   0xa   : > { %p351_p6 = scmp.ge.s32.totalorder %s558_s17, 1  ;;  %p77_p7 = scmp.eq.s32.totalorder %s74_s23, 0 }
   0xb   : > { %p636_p8 = por %p96_p5, %p95_p3  ;;  %p120_p9 = scmp.lt.s32.totalorder %s558_s17, 3 }
   0xc   : > { %s642_s25 = scalar_select %p77_p7, %s546_s14, %s79_s21  }
   0xd   : > { %p121_p10 = pnand %p351_p6, %p120_p9 }
   0xe   : > { %s134_s26 = sand.u32 (!%p121_p10), 1, %s542_s13   ;;  %s362_s27 = sshll.u32 (!%p121_p10), %s550_s15, 7 }
   0xf   : > { %124 = sbr.rel (%p121_p10) target bundleno = 399 (0x18f), region = 28  ;;  %s648_s28 = sshll.u32 (!%p121_p10), %s134_s26, 3 }
  0x10   : > { %s147_s4 = scalar_lea.hbm (!%p121_p10), %s726_s0, %s362_s27  ;;  %s560_s5 = smov (!%p121_p10), [#allocation2]  }
  0x11   : > { %s155_s6 = sshll.u32 (!%p121_p10), %s560_s5, 4  ;;  %s454_s7 = scalar_lea.hbm (!%p121_p10), %s147_s4, 128  ;;  %s156_s6 = int_to_ptr.vmem [resolvable:$true] %s155_s6 }
  0x12   : > { %p455_p11 = scmp.ne.s32.totalorder (!%p121_p10), %s147_s4, %s454_s7  ;;  %s456_s10 = scalar_lea.hbm (!%p121_p10), %s726_s0, 256 }
  0x13   : > { %p457_p12 = scmp.lt.u32.totalorder (!%p121_p10), %s147_s4, %s726_s0  ;;  %p458_p13 = scmp.lt.u32.totalorder (!%p121_p10), %s456_s10, %s454_s7 }
  0x14   : > { %p460_p1 = scmp.lt.u32.totalorder (!%p121_p10), %s454_s7, %s147_s4 }
  0x15   : > { %p459_p0 = por (!%p121_p10), %p458_p13, %p457_p12 }
  0x17   : > { %p461_p2 = por %p460_p1, %p459_p0 }
  0x19   : > { %p462_p3 = pnand %p461_p2, %p455_p11 }
  0x1b   : > { %465 = shalt.err (!%p462_p3)  }
  0x1c   : > { %s466_s19 = scalar_lea.vmem %s156_s6, 128  ;;  %p471_p6 = scmp.lt.s32.totalorder %s156_s6, %s156_s6 }
  0x1d   : > { %p467_p5 = scmp.ne.s32.totalorder %s156_s6, %s466_s19  ;;  %p472_p7 = scmp.lt.s32.totalorder %s466_s19, %s466_s19 }
  0x1f   : > { %p473_p9 = por %p472_p7, %p471_p6 }
  0x21   : > { %p474_p10 = pnand %p473_p9, %p467_p5 }
  0x23   : > { %477 = shalt.err (!%p474_p10)  }
  0x24   : > { %158 = dma.hbm_to_vmem [thread:$0]  %s147_s4, 128, %s156_s6, [#allocation3] }
  0x25   : > { %s136_s21 = scalar_lea.vmem [#allocation4], %s648_s28 }
  0x26   : > { %530 = dma.done.wait [#allocation3], 128 }
  0x27   : > { %531 = vsyncadd [#allocation3], 4294967168  ;;  %v561_v0 = vmov 0.0|0.0   ;;  %v164_v1 = vld [vmem:[#allocation2] sm:$0xff]  ;;  %vm562_vm0 = vmmov 0   ;;  %v563_v4 = vmov 0.0   ;;  %s675_s10 = scalar_lea.hbm %s729_s3, %s362_s27 }
  0x28   : > { %373 = vmatprep.subr.bf16.mxu0 %v561_v0  ;;  %v166_v2 = vcombine.low %v164_v1, %v164_v1  ;;  %v174_v3 = vcombine.high %v164_v1, %v164_v1  ;;  %370 = vmatprep.mubr.msk.f32.mxu0 %vm562_vm0, %v563_v4  ;;  %v184_v6 = vld [vmem:[%s728_s2] sm:$0xff]  ;;  %s564_s30 = smov 127   ;;  %v565_v8 = vmov 0   ;;  %s566_s4 = smov 126   ;;  %vm171_vm1 = vcmask 1039360  }
  0x29   : > { %450 = vset.pattern.permute.xlu1 %v565_v8  ;;  %451 = vset.pattern.permute.xlu0 %v565_v8  ;;  %vm179_vm2 = vcmask 1031168   ;;  %vm181_vm3 = vcmask 1043456   ;;  %vm567_vm4 = vmmov 1   ;;  %v183_v19 = vld [vmem:[%s727_s1] sm:$0xff]  ;;  %vm190_vm6 = vcmask 97280   ;;  %s282_s7 = sshll.u32 %s136_s21, 4  ;;  %s677_s7 = int_to_ptr.vmem [resolvable:$true] %s282_s7 }
  0x2a   : > { %v440_v5 = vpack.i.bf16 %v164_v1, %v166_v2  ;;  %v445_v7 = vpack.i.bf16 %v174_v3, %v164_v1  ;;  %187 = vperm.xlu1 %450, %v184_v6   ;;  %vm375_vm5 = vmpackc.low %vm181_vm3, %vm567_vm4  ;;  %s268_s11 = scalar_lea.sflag [#allocation5], %s134_s26  ;;  %s478_s18 = scalar_lea.vmem %s677_s7, 128 }
  0x2b   : > { %p479_p11 = scmp.ne.s32.totalorder %s677_s7, %s478_s18  ;;  %s568_s15 = smov [#allocation4]  }
  0x2c   : > { %441 = vrot.lane.b32.xlu0 %v440_v5, %s564_s30  ;;  %s482_s19 = sshll.u32 %s568_s15, 4  ;;  %s483_s19 = int_to_ptr.vmem [resolvable:$false] %s482_s19 }
  0x2d   : > { %p480_p12 = pnand %p479_p11, %p629_p4  ;;  %s484_s23 = scalar_lea.vmem %s483_s19, 256 }
  0x2e   : > { %p485_p0 = scmp.lt.s32.totalorder %s677_s7, %s483_s19  ;;  %p486_p1 = scmp.lt.s32.totalorder %s484_s23, %s478_s18 }
  0x2f   : > { %p481_p13 = pneg %p480_p12 }
  0x30   : > { %446 = vrot.lane.b32.xlu0 %v445_v7, %s566_s4  ;;  %p487_p2 = por %p486_p1, %p485_p0 }
  0x32   : > { %p488_p3 = pnand %p487_p2, %p481_p13 }
  0x9e   : > { %v442_v9 = vpop.permute.xlu0 %441 }
  0x9f   : > { %v444_v10 = vunpack.i.h.bf16 %v442_v9  ;;  %v443_v11 = vunpack.i.l.bf16 %v442_v9 }
  0xa1   : > { %v172_v12 = vsel %vm171_vm1, %v443_v11, %v444_v10 }
  0xa2   : > { %v447_v13 = vpop.permute.xlu0 %446  ;;  %v182_v17 = vsel %vm181_vm3, %v164_v1, %v172_v12 }
  0xa3   : > { %v449_v14 = vunpack.i.h.bf16 %v447_v13  ;;  %v448_v15 = vunpack.i.l.bf16 %v447_v13 }
  0xa5   : > { %v180_v16 = vsel %vm179_vm2, %v448_v15, %v449_v14 }
  0xa6   : > { %v374_v18 = vpack.c.bf16 %v180_v16, %v182_v17 }
  0xa8   : > { %376 = vmatpush3.bf16.msk.msra.mxu0 %vm375_vm5, %v374_v18 }
  0xa9   : > { %v188_v20 = vpop.permute.xlu1 %187 }
  0xab   : > { %371 = vmatmul.mubr.msk.f32.vlgmr.msra.gmra.mrb[0].mxu0 %vm190_vm6, %v183_v19 }
 0x17e   : > { %v262_v21 = vpop.f32.mrb[0].mxu0 }
 0x17f   : > { %v263_v22 = vadd.f32 %v262_v21, %v188_v20  ;;  %v372_v23 = vpop.f32.mrb[1].mxu0 }
 0x181   : > { %266 = vst [vmem:[%s136_s21] sm:$0xff] %v263_v22 }
 0x182   : > { %491 = shalt.err (!%p488_p3)
}
 0x183   : > { %s492_s26 = scalar_lea.hbm %s675_s10, 128  ;;  %s496_s21 = scalar_lea.hbm %s729_s3, 256 }
 0x184   : > { %p493_p5 = scmp.ne.s32.totalorder %s675_s10, %s492_s26  ;;  %p497_p9 = scmp.lt.u32.totalorder %s675_s10, %s729_s3 }
 0x185   : > { %p498_p10 = scmp.lt.u32.totalorder %s496_s21, %s492_s26  ;;  %p500_p12 = scmp.lt.u32.totalorder %s492_s26, %s675_s10 }
 0x186   : > { %p494_p6 = pnand %p493_p5, %p629_p4 }
 0x187   : > { %p499_p11 = por %p498_p10, %p497_p9 }
 0x188   : > { %p495_p7 = pneg %p494_p6 }
 0x189   : > { %p501_p13 = por %p500_p12, %p499_p11 }
 0x18b   : > { %p502_p0 = pnand %p501_p13, %p495_p7 }
 0x18d   : > { %505 = shalt.err (!%p502_p0)
}
 0x18e   : > { %377 = dma.vmem_to_hbm [thread:$0]  (%p629_p4), %s677_s7, 128, %s675_s10, %s268_s11  }
 0x18f PF: > { %p383_p1 = scmp.ge.s32.totalorder %s558_s17, 2  ;;  %s294_s4 = sand.u32 1, %s538_s12  }
 0x190   : > { %s295_s5 = scalar_lea.sflag [#allocation5], %s294_s4 }
 0x191   : > { %p380_p2 = pnand %p383_p1, %p636_p8 }
 0x193   : > { %533 = dma.done.wait (!%p380_p2), %s295_s5, 128  }
 0x194   : > { %535 = vsyncadd (!%p380_p2), %s295_s5, 4294967168  ;;  %s16_s17 = sadd.s32 1, %s558_s17   ;;  %s732_s12 = smov %s542_s13 }
 0x195   : > { %p13_p3 = scmp.ge.s32.totalorder %s16_s17, 4   ;;  %s733_s13 = smov %s546_s14 }
 0x196   : > { %s734_s14 = smov %s642_s25  ;;  %s735_s15 = smov %s554_s16 }
 0x197   : > { %s736_s16 = smov %s738_s20  ;;  %15 = sbr.rel (!%p13_p3) target bundleno = 4 (0x4), region = 69 }
 0x19e   :  { %300 = vsyncpa [#allocation5], 1 }
 0x19f   :  { %302 = vsyncpa [#allocation5 + $0x1], 1 }
 0x1a0   :  { %303 = vsyncmov [#allocation3] }
 0x1a3   :  { %s304_s22 = vpop.sfrf %303 }
 0x1a4   :  { %p361_p4 = scmp.ne.s32.totalorder %s304_s22, 0 }
 0x1a6   :  { %308 = shalt.err (%p361_p4)  }

// kernel: tpu_custom_call.1
= control target key start
LH: loop header
LB: loop body
LE: loop exit
PB: predicated region body
PF: predicated region fallthrough
CT: control target
= control target key end

     0   :  { %8 = vsyncpa [#allocation5], 0  ;;  %s726_s0 = inlined_call_operand.hbm [shape: f32[2,4,256], index: 0, kind: input, shape index: {}]   ;;  %s727_s1 = inlined_call_operand.vmem [shape: f32[8,12], index: 1, kind: input, shape index: {}]   ;;  %s728_s2 = inlined_call_operand.vmem [shape: f32[8,1], index: 2, kind: input, shape index: {}]   ;;  %s729_s3 = inlined_call_operand.hbm [shape: f32[2,8,128], index: 3, kind: output, shape index: {}]  }
   0x1   :  { %10 = vsyncpa [#allocation5 + $0x1], 0  ;;  %s589_s12 = smov 0   ;;  %s591_s13 = smov 0  }
   0x2   :  { %s593_s14 = smov 0   ;;  %s595_s15 = smov 0  }
   0x3   :  { %s597_s16 = smov 0   ;;  %s599_s17 = smov 0  }
   0x4 LB: > { %s348_s18 = sadd.s32 4294967295, %s558_s17   ;;  %s349_s19 = sadd.s32 4294967294, %s558_s17   ;;  %s558_s17 = sphi %s599_s17, %s16_s17   ;;  %s554_s16 = sphi %s597_s16, %s736_s16   ;;  %s550_s15 = sphi %s595_s15, %s735_s15   ;;  %s546_s14 = sphi %s593_s14, %s734_s14   ;;  %s542_s13 = sphi %s591_s13, %s733_s13   ;;  %s538_s12 = sphi %s589_s12, %s732_s12  }
   0x5   : > { %s28_s20 = sadd.s32 1, %s554_s16  ;;  %s79_s21 = sadd.s32 1, %s546_s14 }
   0x6   : > { %p30_p0 = scmp.ge.s32.totalorder %s28_s20, 2  ;;  %p89_p1 = scmp.ne.s32.totalorder %s546_s14, %s542_s13 }
   0x7   : > { %p90_p2 = scmp.eq.s32.totalorder %s348_s18, 1  ;;  %p95_p3 = scmp.ne.s32.totalorder %s542_s13, %s538_s12 }
   0x8   : > { %s738_s20 = smov (%p30_p0, %s28_s20), 0  ;;  %p96_p5 = scmp.eq.s32.totalorder %s349_s19, 1 }
   0x9   : > { %p629_p4 = por %p90_p2, %p89_p1  ;;  %s74_s23 = ssub.s32 %s554_s16, %s738_s20 }
   0xa   : > { %p351_p6 = scmp.ge.s32.totalorder %s558_s17, 1  ;;  %p77_p7 = scmp.eq.s32.totalorder %s74_s23, 0 }
   0xb   : > { %p636_p8 = por %p96_p5, %p95_p3  ;;  %p120_p9 = scmp.lt.s32.totalorder %s558_s17, 3 }
   0xc   : > { %s642_s25 = scalar_select %p77_p7, %s546_s14, %s79_s21  }
   0xd   : > { %p121_p10 = pnand %p351_p6, %p120_p9 }
   0xe   : > { %s134_s26 = sand.u32 (!%p121_p10), 1, %s542_s13   ;;  %s362_s27 = sshll.u32 (!%p121_p10), %s550_s15, 7 }
   0xf   : > { %124 = sbr.rel (%p121_p10) target bundleno = 399 (0x18f), region = 28  ;;  %s648_s28 = sshll.u32 (!%p121_p10), %s134_s26, 3 }
  0x10   : > { %s147_s4 = scalar_lea.hbm (!%p121_p10), %s726_s0, %s362_s27  ;;  %s560_s5 = smov (!%p121_p10), [#allocation2]  }
  0x11   : > { %s155_s6 = sshll.u32 (!%p121_p10), %s560_s5, 4  ;;  %s454_s7 = scalar_lea.hbm (!%p121_p10), %s147_s4, 128  ;;  %s156_s6 = int_to_ptr.vmem [resolvable:$true] %s155_s6 }
  0x12   : > { %p455_p11 = scmp.ne.s32.totalorder (!%p121_p10), %s147_s4, %s454_s7  ;;  %s456_s10 = scalar_lea.hbm (!%p121_p10), %s726_s0, 256 }
  0x13   : > { %p457_p12 = scmp.lt.u32.totalorder (!%p121_p10), %s147_s4, %s726_s0  ;;  %p458_p13 = scmp.lt.u32.totalorder (!%p121_p10), %s456_s10, %s454_s7 }
  0x14   : > { %p460_p1 = scmp.lt.u32.totalorder (!%p121_p10), %s454_s7, %s147_s4 }
  0x15   : > { %p459_p0 = por (!%p121_p10), %p458_p13, %p457_p12 }
  0x17   : > { %p461_p2 = por %p460_p1, %p459_p0 }
  0x19   : > { %p462_p3 = pnand %p461_p2, %p455_p11 }
  0x1b   : > { %465 = shalt.err (!%p462_p3)  }
  0x1c   : > { %s466_s19 = scalar_lea.vmem %s156_s6, 128  ;;  %p471_p6 = scmp.lt.s32.totalorder %s156_s6, %s156_s6 }
  0x1d   : > { %p467_p5 = scmp.ne.s32.totalorder %s156_s6, %s466_s19  ;;  %p472_p7 = scmp.lt.s32.totalorder %s466_s19, %s466_s19 }
  0x1f   : > { %p473_p9 = por %p472_p7, %p471_p6 }
  0x21   : > { %p474_p10 = pnand %p473_p9, %p467_p5 }
  0x23   : > { %477 = shalt.err (!%p474_p10)  }
  0x24   : > { %158 = dma.hbm_to_vmem [thread:$0]  %s147_s4, 128, %s156_s6, [#allocation3] }
  0x25   : > { %s136_s21 = scalar_lea.vmem [#allocation4], %s648_s28 }
  0x26   : > { %530 = dma.done.wait [#allocation3], 128 }
  0x27   : > { %531 = vsyncadd [#allocation3], 4294967168  ;;  %v561_v0 = vmov 0.0|0.0   ;;  %v164_v1 = vld [vmem:[#allocation2] sm:$0xff]  ;;  %vm562_vm0 = vmmov 0   ;;  %v563_v4 = vmov 0.0   ;;  %s675_s10 = scalar_lea.hbm %s729_s3, %s362_s27 }
  0x28   : > { %373 = vmatprep.subr.bf16.mxu0 %v561_v0  ;;  %v166_v2 = vcombine.low %v164_v1, %v164_v1  ;;  %v174_v3 = vcombine.high %v164_v1, %v164_v1  ;;  %370 = vmatprep.mubr.msk.f32.mxu0 %vm562_vm0, %v563_v4  ;;  %v184_v6 = vld [vmem:[%s728_s2] sm:$0xff]  ;;  %s564_s30 = smov 127   ;;  %v565_v8 = vmov 0   ;;  %s566_s4 = smov 126   ;;  %vm171_vm1 = vcmask 1039360  }
  0x29   : > { %450 = vset.pattern.permute.xlu1 %v565_v8  ;;  %451 = vset.pattern.permute.xlu0 %v565_v8  ;;  %vm179_vm2 = vcmask 1031168   ;;  %vm181_vm3 = vcmask 1043456   ;;  %vm567_vm4 = vmmov 1   ;;  %v183_v19 = vld [vmem:[%s727_s1] sm:$0xff]  ;;  %vm190_vm6 = vcmask 97280   ;;  %s282_s7 = sshll.u32 %s136_s21, 4  ;;  %s677_s7 = int_to_ptr.vmem [resolvable:$true] %s282_s7 }
  0x2a   : > { %v440_v5 = vpack.i.bf16 %v164_v1, %v166_v2  ;;  %v445_v7 = vpack.i.bf16 %v174_v3, %v164_v1  ;;  %187 = vperm.xlu1 %450, %v184_v6   ;;  %vm375_vm5 = vmpackc.low %vm181_vm3, %vm567_vm4  ;;  %s268_s11 = scalar_lea.sflag [#allocation5], %s134_s26  ;;  %s478_s18 = scalar_lea.vmem %s677_s7, 128 }
  0x2b   : > { %p479_p11 = scmp.ne.s32.totalorder %s677_s7, %s478_s18  ;;  %s568_s15 = smov [#allocation4]  }
  0x2c   : > { %441 = vrot.lane.b32.xlu0 %v440_v5, %s564_s30  ;;  %s482_s19 = sshll.u32 %s568_s15, 4  ;;  %s483_s19 = int_to_ptr.vmem [resolvable:$false] %s482_s19 }
  0x2d   : > { %p480_p12 = pnand %p479_p11, %p629_p4  ;;  %s484_s23 = scalar_lea.vmem %s483_s19, 256 }
  0x2e   : > { %p485_p0 = scmp.lt.s32.totalorder %s677_s7, %s483_s19  ;;  %p486_p1 = scmp.lt.s32.totalorder %s484_s23, %s478_s18 }
  0x2f   : > { %p481_p13 = pneg %p480_p12 }
  0x30   : > { %446 = vrot.lane.b32.xlu0 %v445_v7, %s566_s4  ;;  %p487_p2 = por %p486_p1, %p485_p0 }
  0x32   : > { %p488_p3 = pnand %p487_p2, %p481_p13 }
  0x9e   : > { %v442_v9 = vpop.permute.xlu0 %441 }
  0x9f   : > { %v444_v10 = vunpack.i.h.bf16 %v442_v9  ;;  %v443_v11 = vunpack.i.l.bf16 %v442_v9 }
  0xa1   : > { %v172_v12 = vsel %vm171_vm1, %v443_v11, %v444_v10 }
  0xa2   : > { %v447_v13 = vpop.permute.xlu0 %446  ;;  %v182_v17 = vsel %vm181_vm3, %v164_v1, %v172_v12 }
  0xa3   : > { %v449_v14 = vunpack.i.h.bf16 %v447_v13  ;;  %v448_v15 = vunpack.i.l.bf16 %v447_v13 }
  0xa5   : > { %v180_v16 = vsel %vm179_vm2, %v448_v15, %v449_v14 }
  0xa6   : > { %v374_v18 = vpack.c.bf16 %v180_v16, %v182_v17 }
  0xa8   : > { %376 = vmatpush3.bf16.msk.msra.mxu0 %vm375_vm5, %v374_v18 }
  0xa9   : > { %v188_v20 = vpop.permute.xlu1 %187 }
  0xab   : > { %371 = vmatmul.mubr.msk.f32.vlgmr.msra.gmra.mrb[0].mxu0 %vm190_vm6, %v183_v19 }
 0x17e   : > { %v262_v21 = vpop.f32.mrb[0].mxu0 }
 0x17f   : > { %v263_v22 = vadd.f32 %v262_v21, %v188_v20  ;;  %v372_v23 = vpop.f32.mrb[1].mxu0 }
 0x181   : > { %266 = vst [vmem:[%s136_s21] sm:$0xff] %v263_v22 }
 0x182   : > { %491 = shalt.err (!%p488_p3)
}
 0x183   : > { %s492_s26 = scalar_lea.hbm %s675_s10, 128  ;;  %s496_s21 = scalar_lea.hbm %s729_s3, 256 }
 0x184   : > { %p493_p5 = scmp.ne.s32.totalorder %s675_s10, %s492_s26  ;;  %p497_p9 = scmp.lt.u32.totalorder %s675_s10, %s729_s3 }
 0x185   : > { %p498_p10 = scmp.lt.u32.totalorder %s496_s21, %s492_s26  ;;  %p500_p12 = scmp.lt.u32.totalorder %s492_s26, %s675_s10 }
 0x186   : > { %p494_p6 = pnand %p493_p5, %p629_p4 }
 0x187   : > { %p499_p11 = por %p498_p10, %p497_p9 }
 0x188   : > { %p495_p7 = pneg %p494_p6 }
 0x189   : > { %p501_p13 = por %p500_p12, %p499_p11 }
 0x18b   : > { %p502_p0 = pnand %p501_p13, %p495_p7 }
 0x18d   : > { %505 = shalt.err (!%p502_p0)
}
 0x18e   : > { %377 = dma.vmem_to_hbm [thread:$0]  (%p629_p4), %s677_s7, 128, %s675_s10, %s268_s11  }
 0x18f PF: > { %p383_p1 = scmp.ge.s32.totalorder %s558_s17, 2  ;;  %s294_s4 = sand.u32 1, %s538_s12  }
 0x190   : > { %s295_s5 = scalar_lea.sflag [#allocation5], %s294_s4 }
 0x191   : > { %p380_p2 = pnand %p383_p1, %p636_p8 }
 0x193   : > { %533 = dma.done.wait (!%p380_p2), %s295_s5, 128  }
 0x194   : > { %535 = vsyncadd (!%p380_p2), %s295_s5, 4294967168  ;;  %s16_s17 = sadd.s32 1, %s558_s17   ;;  %s732_s12 = smov %s542_s13 }
 0x195   : > { %p13_p3 = scmp.ge.s32.totalorder %s16_s17, 4   ;;  %s733_s13 = smov %s546_s14 }
 0x196   : > { %s734_s14 = smov %s642_s25  ;;  %s735_s15 = smov %s554_s16 }
 0x197   : > { %s736_s16 = smov %s738_s20  ;;  %15 = sbr.rel (!%p13_p3) target bundleno = 4 (0x4), region = 69 }
 0x19e   :  { %300 = vsyncpa [#allocation5], 1 }
 0x19f   :  { %302 = vsyncpa [#allocation5 + $0x1], 1 }
 0x1a0   :  { %303 = vsyncmov [#allocation3] }
 0x1a3   :  { %s304_s22 = vpop.sfrf %303 }
 0x1a4   :  { %p361_p4 = scmp.ne.s32.totalorder %s304_s22, 0 }
 0x1a6   :  { %308 = shalt.err (%p361_p4)  }

</bundles_post_ra>
